<compile_context>
chip_gen: v5e
topology: v5e:2x2
jax: 0.10.0
libtpu: 0.0.40
codegen_flags: <defaults>
</compile_context>

<pallas_src>
import jax
import jax.numpy as jnp
import numpy as np
from jax.experimental import pallas as pl
from jax.experimental.pallas import tpu as pltpu


def _laplacian_kernel(x_ref, out_ref):
    # x_ref  : VMEM (H, W, P)      -- P planes, plane index on the lane axis
    # out_ref: VMEM (2, H, W, P)
    x = x_ref[...].astype(jnp.float32)            # upcast once per tile

    # Replicate-clamped shifts along H (axis 0): rows h-1 and h+1.
    up = jnp.concatenate([x[:1], x[:-1]], axis=0)
    down = jnp.concatenate([x[1:], x[-1:]], axis=0)
    col_sum = up + x + down                       # 3x1 column box sum

    # Replicate-clamped shifts along W (axis 1): cols w-1 and w+1.
    left = jnp.concatenate([col_sum[:, :1], col_sum[:, :-1]], axis=1)
    right = jnp.concatenate([col_sum[:, 1:], col_sum[:, -1:]], axis=1)
    box = left + col_sum + right                  # full 3x3 box sum

    # [[-1,-1,-1],[-1,8,-1],[-1,-1,-1]]  ==  9*center - 3x3 box sum.
    acc = (9.0 * x - box).astype(out_ref.dtype)

    # kernel_y == kernel_x.T == kernel_x -> both output channels are identical;
    # one wide store per channel (keeps the single vst slot on v5e happy).
    out_ref[0] = acc
    out_ref[1] = acc


def my_laplacian(x, *, vmem_budget_bytes=24 * 1024 * 1024):
    """x: (B, C, H, W). Returns (B, C, 2, H, W), dtype preserved."""
    B, C, H, W = x.shape
    N = B * C
    itemsize = jnp.dtype(x.dtype).itemsize

    # Planes on the lane (minor) axis: (H, W, N).
    xt = jnp.transpose(x.reshape(N, H, W), (1, 2, 0))

    # Plane-block size: as many planes as fit the VMEM budget with
    # (1 input block + 2 output channels) x 2 (double buffering), rounded to a
    # multiple of 128 lanes, at least 128, and no larger than needed for N.
    per_plane_bytes = 6 * H * W * itemsize
    p_budget = max(1, vmem_budget_bytes // per_plane_bytes)
    P = max(128, (p_budget // 128) * 128)
    P = min(P, pl.cdiv(N, 128) * 128)
    # TODO(synk): for very large H*W (block over budget even at P=128), H would
    # also need to be tiled with a halo exchange; not needed at these shapes.

    N_pad = pl.cdiv(N, P) * P
    if N_pad != N:
        xt = jnp.pad(xt, ((0, 0), (0, 0), (0, N_pad - N)))

    out = pl.pallas_call(
        _laplacian_kernel,
        out_shape=jax.ShapeDtypeStruct((2, H, W, N_pad), x.dtype),
        grid=(N_pad // P,),
        in_specs=[pl.BlockSpec((H, W, P), lambda i: (0, 0, i))],
        out_specs=pl.BlockSpec((2, H, W, P), lambda i: (0, 0, 0, i)),
        compiler_params=pltpu.CompilerParams(
            dimension_semantics=("parallel",),
            vmem_limit_bytes=32 * 1024 * 1024,
        ),
    )(xt)

    # (2, H, W, N_pad) -> (B, C, 2, H, W)
    out = jnp.transpose(out[..., :N], (3, 0, 1, 2)).reshape(B, C, 2, H, W)
    return out


def _reference(x_np):
    kernel_x = np.array([[-1.0, -1.0, -1.0],
                         [-1.0,  8.0, -1.0],
                         [-1.0, -1.0, -1.0]], dtype=np.float32)
    kernel = np.stack([kernel_x, kernel_x.T])  # (2, 3, 3)
    B, C, H, W = x_np.shape
    xp = np.pad(x_np.reshape(B * C, H, W), ((0, 0), (1, 1), (1, 1)), mode="edge")
    out = np.zeros((B * C, 2, H, W), np.float32)
    for f in range(2):
        for dy in range(3):
            for dx in range(3):
                out[:, f] += kernel[f, dy, dx] * xp[:, dy:dy + H, dx:dx + W]
    return out.reshape(B, C, 2, H, W)


if __name__ == "__main__":
    # Deterministic example input: B=2, C=4, H=W=16, float32 NCHW.
    key = jax.random.PRNGKey(0)
    x = jax.random.normal(key, (2, 4, 16, 16), dtype=jnp.float32)

    out = jax.jit(my_laplacian)(x)
    out = jax.block_until_ready(out)

    ref = _reference(np.asarray(x))
    assert out.shape == (2, 4, 2, 16, 16), out.shape
    np.testing.assert_allclose(np.asarray(out), ref, rtol=1e-5, atol=1e-5)
    print("KERNEL_OK")
</pallas_src>

<mosaic_0001>
module attributes {stable_mosaic.version = 11 : i64} {
  func.func @_laplacian_kernel(%arg0: i32, %arg1: memref<16x16x128xf32, #tpu.memory_space<vmem>>, %arg2: memref<2x16x16x128xf32, #tpu.memory_space<vmem>>) attributes {dimension_semantics = [#tpu.dimension_semantics<parallel>], iteration_bounds = array<i64: 1>, scalar_prefetch = 0 : i64, scratch_operands = 0 : i64, tpu.core_type = #tpu.core_type<tc>, window_params = [{transform_indices = @transform_0, window_bounds = array<i64: 16, 16, 128>}, {transform_indices = @transform_1, window_bounds = array<i64: 2, 16, 16, 128>}]} {
    %c0 = arith.constant 0 : index
    %c0_0 = arith.constant 0 : index
    %c0_1 = arith.constant 0 : index
    %0 = vector.load %arg1[%c0, %c0_0, %c0_1] : memref<16x16x128xf32, #tpu.memory_space<vmem>>, vector<16x16x128xf32>
    %1 = vector.extract_strided_slice %0 {offsets = [0, 0, 0], sizes = [1, 16, 128], strides = [1, 1, 1]} : vector<16x16x128xf32> to vector<1x16x128xf32>
    %2 = vector.extract_strided_slice %0 {offsets = [0, 0, 0], sizes = [15, 16, 128], strides = [1, 1, 1]} : vector<16x16x128xf32> to vector<15x16x128xf32>
    %3 = tpu.concatenate %1, %2 in 0 : vector<1x16x128xf32>, vector<15x16x128xf32> -> vector<16x16x128xf32>
    %4 = vector.extract_strided_slice %0 {offsets = [1, 0, 0], sizes = [15, 16, 128], strides = [1, 1, 1]} : vector<16x16x128xf32> to vector<15x16x128xf32>
    %5 = vector.extract_strided_slice %0 {offsets = [15, 0, 0], sizes = [1, 16, 128], strides = [1, 1, 1]} : vector<16x16x128xf32> to vector<1x16x128xf32>
    %6 = tpu.concatenate %4, %5 in 0 : vector<15x16x128xf32>, vector<1x16x128xf32> -> vector<16x16x128xf32>
    %7 = arith.addf %3, %0 : vector<16x16x128xf32>
    %8 = arith.addf %7, %6 : vector<16x16x128xf32>
    %9 = vector.extract_strided_slice %8 {offsets = [0, 0, 0], sizes = [16, 1, 128], strides = [1, 1, 1]} : vector<16x16x128xf32> to vector<16x1x128xf32>
    %10 = vector.extract_strided_slice %8 {offsets = [0, 0, 0], sizes = [16, 15, 128], strides = [1, 1, 1]} : vector<16x16x128xf32> to vector<16x15x128xf32>
    %11 = tpu.concatenate %9, %10 in 1 : vector<16x1x128xf32>, vector<16x15x128xf32> -> vector<16x16x128xf32>
    %12 = vector.extract_strided_slice %8 {offsets = [0, 1, 0], sizes = [16, 15, 128], strides = [1, 1, 1]} : vector<16x16x128xf32> to vector<16x15x128xf32>
    %13 = vector.extract_strided_slice %8 {offsets = [0, 15, 0], sizes = [16, 1, 128], strides = [1, 1, 1]} : vector<16x16x128xf32> to vector<16x1x128xf32>
    %14 = tpu.concatenate %12, %13 in 1 : vector<16x15x128xf32>, vector<16x1x128xf32> -> vector<16x16x128xf32>
    %15 = arith.addf %11, %8 : vector<16x16x128xf32>
    %16 = arith.addf %15, %14 : vector<16x16x128xf32>
    %cst = arith.constant 9.000000e+00 : f32
    %17 = vector.broadcast %cst : f32 to vector<16x16x128xf32>
    %18 = arith.mulf %17, %0 : vector<16x16x128xf32>
    %19 = arith.subf %18, %16 : vector<16x16x128xf32>
    %c0_2 = arith.constant 0 : index
    %c0_3 = arith.constant 0 : index
    %c0_4 = arith.constant 0 : index
    %c0_5 = arith.constant 0 : index
    %20 = vector.load %arg2[%c0_2, %c0_3, %c0_4, %c0_5] : memref<2x16x16x128xf32, #tpu.memory_space<vmem>>, vector<1x16x16x128xf32>
    %21 = vector.shape_cast %20 : vector<1x16x16x128xf32> to vector<16x16x128xf32>
    %22 = vector.shape_cast %19 : vector<16x16x128xf32> to vector<1x16x16x128xf32>
    tpu.vector_store %arg2[%c0_2, %c0_3, %c0_4, %c0_5], %22 {strides = array<i32>} : memref<2x16x16x128xf32, #tpu.memory_space<vmem>>, vector<1x16x16x128xf32>,
    %c1 = arith.constant 1 : index
    %c0_6 = arith.constant 0 : index
    %c0_7 = arith.constant 0 : index
    %c0_8 = arith.constant 0 : index
    %23 = vector.load %arg2[%c1, %c0_6, %c0_7, %c0_8] : memref<2x16x16x128xf32, #tpu.memory_space<vmem>>, vector<1x16x16x128xf32>
    %24 = vector.shape_cast %23 : vector<1x16x16x128xf32> to vector<16x16x128xf32>
    %25 = vector.shape_cast %19 : vector<16x16x128xf32> to vector<1x16x16x128xf32>
    tpu.vector_store %arg2[%c1, %c0_6, %c0_7, %c0_8], %25 {strides = array<i32>} : memref<2x16x16x128xf32, #tpu.memory_space<vmem>>, vector<1x16x16x128xf32>,
    return
  }
  func.func @transform_0(%arg0: i32) -> (i32, i32, i32) {
    %c0_i32 = arith.constant 0 : i32
    %c0_i32_0 = arith.constant 0 : i32
    %c0_i32_1 = arith.constant 0 : i32
    return %c0_i32, %c0_i32_0, %arg0 : i32, i32, i32
  }
  func.func @transform_1(%arg0: i32) -> (i32, i32, i32, i32) {
    %c0_i32 = arith.constant 0 : i32
    %c0_i32_0 = arith.constant 0 : i32
    %c0_i32_1 = arith.constant 0 : i32
    %c0_i32_2 = arith.constant 0 : i32
    return %c0_i32, %c0_i32_0, %c0_i32_1, %arg0 : i32, i32, i32, i32
  }
}

</mosaic_0001>

<bundles_post_ra>
// kernel: my_laplacian.1
= control target key start
LH: loop header
LB: loop body
LE: loop exit
PB: predicated region body
PF: predicated region fallthrough
CT: control target
= control target key end

     0   :  { %vm136_vm0 = vcmask 1040384   ;;  %vm233_vm1 = vcmask 1046528   ;;  %s927_s0 = inlined_call_operand.vmem [shape: f32[16,16,128], index: 0, kind: input, shape index: {}]   ;;  %s928_s1 = inlined_call_operand.vmem [shape: f32[2,16,16,128], index: 1, kind: output, shape index: {}]  }
   0x1   :  { %v8_v0 = vld [vmem:[%s927_s0] sm:$0xff]  ;;  %v9_v1 = vld [vmem:[%s927_s0 + $0x8] sm:$0xff]  ;;  %v10_v2 = vld [vmem:[%s927_s0 + $0x10] sm:$0xff] }
   0x2   :  { %v11_v3 = vld [vmem:[%s927_s0 + $0x18] sm:$0xff]  ;;  %v12_v4 = vld [vmem:[%s927_s0 + $0x20] sm:$0xff]  ;;  %v40_v5 = vadd.f32 %v8_v0, %v8_v0  ;;  %v41_v6 = vadd.f32 %v9_v1, %v9_v1  ;;  %v42_v7 = vadd.f32 %v10_v2, %v8_v0  ;;  %v394_v8 = vmul.f32 9.0, %v8_v0  ;;  %v13_v9 = vld [vmem:[%s927_s0 + $0x28] sm:$0xff] }
   0x3   :  { %v395_v10 = vmul.f32 9.0, %v9_v1  ;;  %v43_v11 = vadd.f32 %v11_v3, %v9_v1  ;;  %v396_v12 = vmul.f32 9.0, %v10_v2  ;;  %v397_v13 = vmul.f32 9.0, %v11_v3  ;;  %v14_v38 = vld [vmem:[%s927_s0 + $0x30] sm:$0xff]  ;;  %v15_v42 = vld [vmem:[%s927_s0 + $0x38] sm:$0xff]  ;;  %v16_v59 = vld [vmem:[%s927_s0 + $0x40] sm:$0xff] }
   0x4   :  { %v72_v14 = vadd.f32 %v40_v5, %v10_v2  ;;  %v73_v15 = vadd.f32 %v41_v6, %v11_v3  ;;  %v74_v16 = vadd.f32 %v42_v7, %v12_v4  ;;  %v44_v17 = vadd.f32 %v12_v4, %v10_v2  ;;  %v17_v1 = vld [vmem:[%s927_s0 + $0x48] sm:$0xff] }
   0x5   :  { %v75_v18 = vadd.f32 %v43_v11, %v13_v9  ;;  %v45_v19 = vadd.f32 %v13_v9, %v11_v3  ;;  %v587_v20 = vmul.f32 9.0, %v12_v4  ;;  %v589_v21 = vmul.f32 9.0, %v13_v9 }
   0x6   :  { %v137_v22 = vrot.slane %v72_v14, 7  ;;  %v234_v23 = vrot.slane %v72_v14, 1  ;;  %v235_v24 = vrot.slane %v73_v15, 1  ;;  %v138_v25 = vrot.slane %v73_v15, 7 }
   0x7   :  { %v140_v26 = vrot.slane %v74_v16, 7  ;;  %v237_v27 = vrot.slane %v74_v16, 1  ;;  %v238_v28 = vrot.slane %v75_v18, 1  ;;  %v141_v29 = vrot.slane %v75_v18, 7 }
   0x8   :  { %v217_v30 = vsel %vm136_vm0, %v72_v14, %v137_v22  ;;  %v236_v31 = vsel %vm233_vm1, %v234_v23, %v235_v24  ;;  %v139_v32 = vsel %vm136_vm0, %v137_v22, %v138_v25  ;;  %v314_v33 = vsel %vm233_vm1, %v235_v24, %v73_v15  ;;  %v19_v25 = vld [vmem:[%s927_s0 + $0x58] sm:$0xff] }
   0x9   :  { %v330_v34 = vadd.f32 %v217_v30, %v72_v14  ;;  %v331_v35 = vadd.f32 %v139_v32, %v73_v15  ;;  %v218_v36 = vsel %vm136_vm0, %v74_v16, %v140_v26  ;;  %v239_v37 = vsel %vm233_vm1, %v237_v27, %v238_v28  ;;  %v18_v14 = vld [vmem:[%s927_s0 + $0x50] sm:$0xff] }
   0xa   :  { %v332_v39 = vadd.f32 %v218_v36, %v74_v16  ;;  %v142_v40 = vsel %vm136_vm0, %v140_v26, %v141_v29  ;;  %v315_v41 = vsel %vm233_vm1, %v238_v28, %v75_v18  ;;  %v76_v43 = vadd.f32 %v44_v17, %v14_v38 }
   0xb   :  { %v362_v44 = vadd.f32 %v330_v34, %v236_v31  ;;  %v363_v45 = vadd.f32 %v331_v35, %v314_v33  ;;  %v333_v46 = vadd.f32 %v142_v40, %v75_v18  ;;  %v77_v47 = vadd.f32 %v45_v19, %v15_v42 }
   0xc   :  { %v364_v48 = vadd.f32 %v332_v39, %v239_v37  ;;  %v143_v49 = vrot.slane %v76_v43, 7  ;;  %v240_v50 = vrot.slane %v76_v43, 1  ;;  %v46_v51 = vadd.f32 %v14_v38, %v12_v4  ;;  %v20_v37 = vld [vmem:[%s927_s0 + $0x60] sm:$0xff] }
   0xd   :  { %v426_v52 = vsub.f32 %v394_v8, %v362_v44  ;;  %v427_v53 = vsub.f32 %v395_v10, %v363_v45  ;;  %v365_v54 = vadd.f32 %v333_v46, %v315_v41  ;;  %v241_v55 = vrot.slane %v77_v47, 1  ;;  %v21_v45 = vld [vmem:[%s927_s0 + $0x68] sm:$0xff] }
   0xe   :  { %v428_v56 = vsub.f32 %v396_v12, %v364_v48  ;;  %v219_v57 = vsel %vm136_vm0, %v76_v43, %v143_v49  ;;  %v144_v58 = vrot.slane %v77_v47, 7  ;;  %v47_v60 = vadd.f32 %v15_v42, %v13_v9 }
   0xf   :  { %458 = vst [vmem:[%s928_s1] sm:$0xff] %v426_v52  ;;  %v429_v61 = vsub.f32 %v397_v13, %v365_v54  ;;  %v242_v62 = vsel %vm233_vm1, %v240_v50, %v241_v55  ;;  %v334_v63 = vadd.f32 %v219_v57, %v76_v43  ;;  %v316_v0 = vsel %vm233_vm1, %v241_v55, %v77_v47 }
  0x10   :  { %527 = vst [vmem:[%s928_s1 + $0x100] sm:$0xff] %v426_v52  ;;  %v145_v2 = vsel %vm136_vm0, %v143_v49, %v144_v58  ;;  %v78_v3 = vadd.f32 %v46_v51, %v16_v59  ;;  %v79_v4 = vadd.f32 %v47_v60, %v17_v1  ;;  %v400_v5 = vmul.f32 9.0, %v14_v38  ;;  %v22_v58 = vld [vmem:[%s927_s0 + $0x70] sm:$0xff] }
  0x11   :  { %459 = vst [vmem:[%s928_s1 + $0x8] sm:$0xff] %v427_v53  ;;  %v366_v6 = vadd.f32 %v334_v63, %v242_v62  ;;  %v335_v7 = vadd.f32 %v145_v2, %v77_v47  ;;  %v401_v8 = vmul.f32 9.0, %v15_v42  ;;  %v48_v9 = vadd.f32 %v16_v59, %v14_v38 }
  0x12   :  { %528 = vst [vmem:[%s928_s1 + $0x108] sm:$0xff] %v427_v53  ;;  %v146_v10 = vrot.slane %v78_v3, 7  ;;  %v243_v11 = vrot.slane %v78_v3, 1  ;;  %v244_v12 = vrot.slane %v79_v4, 1  ;;  %v147_v13 = vrot.slane %v79_v4, 7 }
  0x13   :  { %460 = vst [vmem:[%s928_s1 + $0x10] sm:$0xff] %v428_v56  ;;  %v430_v15 = vsub.f32 %v587_v20, %v366_v6  ;;  %v367_v16 = vadd.f32 %v335_v7, %v316_v0  ;;  %v49_v17 = vadd.f32 %v17_v1, %v15_v42  ;;  %v80_v18 = vadd.f32 %v48_v9, %v18_v14 }
  0x14   :  { %529 = vst [vmem:[%s928_s1 + $0x110] sm:$0xff] %v428_v56  ;;  %v220_v19 = vsel %vm136_vm0, %v78_v3, %v146_v10  ;;  %v245_v22 = vsel %vm233_vm1, %v243_v11, %v244_v12  ;;  %v148_v23 = vsel %vm136_vm0, %v146_v10, %v147_v13  ;;  %v317_v24 = vsel %vm233_vm1, %v244_v12, %v79_v4 }
  0x15   :  { %461 = vst [vmem:[%s928_s1 + $0x18] sm:$0xff] %v429_v61  ;;  %v431_v20 = vsub.f32 %v589_v21, %v367_v16  ;;  %v336_v26 = vadd.f32 %v220_v19, %v78_v3  ;;  %v337_v27 = vadd.f32 %v148_v23, %v79_v4  ;;  %v81_v28 = vadd.f32 %v49_v17, %v19_v25  ;;  %v23_v3 = vld [vmem:[%s927_s0 + $0x78] sm:$0xff]  ;;  %v24_v17 = vld [vmem:[%s927_s0 + $0x80] sm:$0xff] }
  0x16   :  { %530 = vst [vmem:[%s928_s1 + $0x118] sm:$0xff] %v429_v61  ;;  %v149_v29 = vrot.slane %v80_v18, 7  ;;  %v246_v30 = vrot.slane %v80_v18, 1  ;;  %v402_v31 = vmul.f32 9.0, %v16_v59  ;;  %v403_v32 = vmul.f32 9.0, %v17_v1 }
  0x17   :  { %462 = vst [vmem:[%s928_s1 + $0x20] sm:$0xff] %v430_v15  ;;  %v368_v33 = vadd.f32 %v336_v26, %v245_v22  ;;  %v369_v34 = vadd.f32 %v337_v27, %v317_v24  ;;  %v247_v35 = vrot.slane %v81_v28, 1  ;;  %v150_v36 = vrot.slane %v81_v28, 7  ;;  %v25_v26 = vld [vmem:[%s927_s0 + $0x88] sm:$0xff] }
  0x18   :  { %531 = vst [vmem:[%s928_s1 + $0x120] sm:$0xff] %v430_v15  ;;  %v221_v21 = vsel %vm136_vm0, %v80_v18, %v149_v29  ;;  %v50_v38 = vadd.f32 %v18_v14, %v16_v59  ;;  %v51_v39 = vadd.f32 %v19_v25, %v17_v1  ;;  %v404_v40 = vmul.f32 9.0, %v18_v14 }
  0x19   :  { %463 = vst [vmem:[%s928_s1 + $0x28] sm:$0xff] %v431_v20  ;;  %v432_v41 = vsub.f32 %v400_v5, %v368_v33  ;;  %v433_v42 = vsub.f32 %v401_v8, %v369_v34  ;;  %v248_v43 = vsel %vm233_vm1, %v246_v30, %v247_v35  ;;  %v338_v44 = vadd.f32 %v221_v21, %v80_v18 }
  0x1a   :  { %532 = vst [vmem:[%s928_s1 + $0x128] sm:$0xff] %v431_v20  ;;  %v151_v46 = vsel %vm136_vm0, %v149_v29, %v150_v36  ;;  %v318_v47 = vsel %vm233_vm1, %v247_v35, %v81_v28  ;;  %v82_v48 = vadd.f32 %v50_v38, %v20_v37  ;;  %v83_v49 = vadd.f32 %v51_v39, %v21_v45  ;;  %v26_v38 = vld [vmem:[%s927_s0 + $0x90] sm:$0xff] }
  0x1b   :  { %464 = vst [vmem:[%s928_s1 + $0x30] sm:$0xff] %v432_v41  ;;  %v370_v50 = vadd.f32 %v338_v44, %v248_v43  ;;  %v339_v51 = vadd.f32 %v151_v46, %v81_v28  ;;  %v405_v52 = vmul.f32 9.0, %v19_v25  ;;  %v52_v53 = vadd.f32 %v20_v37, %v18_v14 }
  0x1c   :  { %533 = vst [vmem:[%s928_s1 + $0x130] sm:$0xff] %v432_v41  ;;  %v152_v54 = vrot.slane %v82_v48, 7  ;;  %v249_v55 = vrot.slane %v82_v48, 1  ;;  %v250_v56 = vrot.slane %v83_v49, 1  ;;  %v153_v57 = vrot.slane %v83_v49, 7 }
  0x1d   :  { %465 = vst [vmem:[%s928_s1 + $0x38] sm:$0xff] %v433_v42  ;;  %v434_v59 = vsub.f32 %v402_v31, %v370_v50  ;;  %v371_v60 = vadd.f32 %v339_v51, %v318_v47  ;;  %v53_v61 = vadd.f32 %v21_v45, %v19_v25  ;;  %v84_v62 = vadd.f32 %v52_v53, %v22_v58  ;;  %v27_v47 = vld [vmem:[%s927_s0 + $0x98] sm:$0xff] }
  0x1e   :  { %534 = vst [vmem:[%s928_s1 + $0x138] sm:$0xff] %v433_v42  ;;  %v222_v63 = vsel %vm136_vm0, %v82_v48, %v152_v54  ;;  %v251_v0 = vsel %vm233_vm1, %v249_v55, %v250_v56  ;;  %v154_v1 = vsel %vm136_vm0, %v152_v54, %v153_v57  ;;  %v319_v2 = vsel %vm233_vm1, %v250_v56, %v83_v49 }
  0x1f   :  { %466 = vst [vmem:[%s928_s1 + $0x40] sm:$0xff] %v434_v59  ;;  %v435_v4 = vsub.f32 %v403_v32, %v371_v60  ;;  %v340_v5 = vadd.f32 %v222_v63, %v82_v48  ;;  %v341_v6 = vadd.f32 %v154_v1, %v83_v49  ;;  %v85_v7 = vadd.f32 %v53_v61, %v23_v3  ;;  %v28_v61 = vld [vmem:[%s927_s0 + $0xa0] sm:$0xff] }
  0x20   :  { %535 = vst [vmem:[%s928_s1 + $0x140] sm:$0xff] %v434_v59  ;;  %v155_v8 = vrot.slane %v84_v62, 7  ;;  %v252_v9 = vrot.slane %v84_v62, 1  ;;  %v406_v10 = vmul.f32 9.0, %v20_v37  ;;  %v407_v11 = vmul.f32 9.0, %v21_v45 }
  0x21   :  { %467 = vst [vmem:[%s928_s1 + $0x48] sm:$0xff] %v435_v4  ;;  %v372_v12 = vadd.f32 %v340_v5, %v251_v0  ;;  %v373_v13 = vadd.f32 %v341_v6, %v319_v2  ;;  %v253_v14 = vrot.slane %v85_v7, 1  ;;  %v156_v15 = vrot.slane %v85_v7, 7  ;;  %v29_v5 = vld [vmem:[%s927_s0 + $0xa8] sm:$0xff] }
  0x22   :  { %536 = vst [vmem:[%s928_s1 + $0x148] sm:$0xff] %v435_v4  ;;  %v223_v16 = vsel %vm136_vm0, %v84_v62, %v155_v8  ;;  %v54_v18 = vadd.f32 %v22_v58, %v20_v37  ;;  %v55_v19 = vadd.f32 %v23_v3, %v21_v45  ;;  %v408_v22 = vmul.f32 9.0, %v22_v58 }
  0x23   :  { %v436_v23 = vsub.f32 %v404_v40, %v372_v12  ;;  %v437_v24 = vsub.f32 %v405_v52, %v373_v13  ;;  %v254_v25 = vsel %vm233_vm1, %v252_v9, %v253_v14  ;;  %v342_v20 = vadd.f32 %v223_v16, %v84_v62 }
  0x24   :  { %v157_v27 = vsel %vm136_vm0, %v155_v8, %v156_v15  ;;  %v320_v28 = vsel %vm233_vm1, %v253_v14, %v85_v7  ;;  %v86_v29 = vadd.f32 %v54_v18, %v24_v17  ;;  %v87_v30 = vadd.f32 %v55_v19, %v25_v26  ;;  %v30_v18 = vld [vmem:[%s927_s0 + $0xb0] sm:$0xff] }
  0x25   :  { %468 = vst [vmem:[%s928_s1 + $0x50] sm:$0xff] %v436_v23  ;;  %v374_v31 = vadd.f32 %v342_v20, %v254_v25  ;;  %v343_v32 = vadd.f32 %v157_v27, %v85_v7  ;;  %v409_v33 = vmul.f32 9.0, %v23_v3  ;;  %v56_v34 = vadd.f32 %v24_v17, %v22_v58 }
  0x26   :  { %537 = vst [vmem:[%s928_s1 + $0x150] sm:$0xff] %v436_v23  ;;  %v158_v35 = vrot.slane %v86_v29, 7  ;;  %v255_v36 = vrot.slane %v86_v29, 1  ;;  %v256_v21 = vrot.slane %v87_v30, 1  ;;  %v159_v37 = vrot.slane %v87_v30, 7 }
  0x27   :  { %469 = vst [vmem:[%s928_s1 + $0x58] sm:$0xff] %v437_v24  ;;  %v438_v39 = vsub.f32 %v406_v10, %v374_v31  ;;  %v375_v40 = vadd.f32 %v343_v32, %v320_v28  ;;  %v57_v41 = vadd.f32 %v25_v26, %v23_v3  ;;  %v88_v42 = vadd.f32 %v56_v34, %v26_v38  ;;  %v31_v28 = vld [vmem:[%s927_s0 + $0xb8] sm:$0xff] }
  0x28   :  { %538 = vst [vmem:[%s928_s1 + $0x158] sm:$0xff] %v437_v24  ;;  %v224_v43 = vsel %vm136_vm0, %v86_v29, %v158_v35  ;;  %v257_v44 = vsel %vm233_vm1, %v255_v36, %v256_v21  ;;  %v160_v45 = vsel %vm136_vm0, %v158_v35, %v159_v37  ;;  %v321_v46 = vsel %vm233_vm1, %v256_v21, %v87_v30 }
  0x29   :  { %470 = vst [vmem:[%s928_s1 + $0x60] sm:$0xff] %v438_v39  ;;  %v439_v48 = vsub.f32 %v407_v11, %v375_v40  ;;  %v344_v49 = vadd.f32 %v224_v43, %v86_v29  ;;  %v345_v50 = vadd.f32 %v160_v45, %v87_v30  ;;  %v89_v51 = vadd.f32 %v57_v41, %v27_v47  ;;  %v32_v41 = vld [vmem:[%s927_s0 + $0xc0] sm:$0xff] }
  0x2a   :  { %539 = vst [vmem:[%s928_s1 + $0x160] sm:$0xff] %v438_v39  ;;  %v161_v52 = vrot.slane %v88_v42, 7  ;;  %v258_v53 = vrot.slane %v88_v42, 1  ;;  %v410_v54 = vmul.f32 9.0, %v24_v17  ;;  %v411_v55 = vmul.f32 9.0, %v25_v26 }
  0x2b   :  { %471 = vst [vmem:[%s928_s1 + $0x68] sm:$0xff] %v439_v48  ;;  %v376_v56 = vadd.f32 %v344_v49, %v257_v44  ;;  %v377_v57 = vadd.f32 %v345_v50, %v321_v46  ;;  %v259_v58 = vrot.slane %v89_v51, 1  ;;  %v162_v59 = vrot.slane %v89_v51, 7  ;;  %v33_v49 = vld [vmem:[%s927_s0 + $0xc8] sm:$0xff] }
  0x2c   :  { %540 = vst [vmem:[%s928_s1 + $0x168] sm:$0xff] %v439_v48  ;;  %v225_v60 = vsel %vm136_vm0, %v88_v42, %v161_v52  ;;  %v58_v62 = vadd.f32 %v26_v38, %v24_v17  ;;  %v59_v63 = vadd.f32 %v27_v47, %v25_v26  ;;  %v412_v0 = vmul.f32 9.0, %v26_v38 }
  0x2d   :  { %v440_v1 = vsub.f32 %v408_v22, %v376_v56  ;;  %v441_v2 = vsub.f32 %v409_v33, %v377_v57  ;;  %v260_v3 = vsel %vm233_vm1, %v258_v53, %v259_v58  ;;  %v346_v4 = vadd.f32 %v225_v60, %v88_v42 }
  0x2e   :  { %v163_v6 = vsel %vm136_vm0, %v161_v52, %v162_v59  ;;  %v322_v7 = vsel %vm233_vm1, %v259_v58, %v89_v51  ;;  %v90_v8 = vadd.f32 %v58_v62, %v28_v61  ;;  %v91_v9 = vadd.f32 %v59_v63, %v29_v5  ;;  %v34_v62 = vld [vmem:[%s927_s0 + $0xd0] sm:$0xff] }
  0x2f   :  { %472 = vst [vmem:[%s928_s1 + $0x70] sm:$0xff] %v440_v1  ;;  %v378_v10 = vadd.f32 %v346_v4, %v260_v3  ;;  %v347_v11 = vadd.f32 %v163_v6, %v89_v51  ;;  %v413_v12 = vmul.f32 9.0, %v27_v47  ;;  %v60_v13 = vadd.f32 %v28_v61, %v26_v38 }
  0x30   :  { %541 = vst [vmem:[%s928_s1 + $0x170] sm:$0xff] %v440_v1  ;;  %v164_v14 = vrot.slane %v90_v8, 7  ;;  %v261_v15 = vrot.slane %v90_v8, 1  ;;  %v262_v16 = vrot.slane %v91_v9, 1  ;;  %v165_v17 = vrot.slane %v91_v9, 7 }
  0x31   :  { %473 = vst [vmem:[%s928_s1 + $0x78] sm:$0xff] %v441_v2  ;;  %v442_v19 = vsub.f32 %v410_v54, %v378_v10  ;;  %v379_v22 = vadd.f32 %v347_v11, %v322_v7  ;;  %v61_v23 = vadd.f32 %v29_v5, %v27_v47  ;;  %v92_v24 = vadd.f32 %v60_v13, %v30_v18  ;;  %v35_v7 = vld [vmem:[%s927_s0 + $0xd8] sm:$0xff] }
  0x32   :  { %542 = vst [vmem:[%s928_s1 + $0x178] sm:$0xff] %v441_v2  ;;  %v226_v25 = vsel %vm136_vm0, %v90_v8, %v164_v14  ;;  %v263_v20 = vsel %vm233_vm1, %v261_v15, %v262_v16  ;;  %v166_v26 = vsel %vm136_vm0, %v164_v14, %v165_v17  ;;  %v323_v27 = vsel %vm233_vm1, %v262_v16, %v91_v9 }
  0x33   :  { %474 = vst [vmem:[%s928_s1 + $0x80] sm:$0xff] %v442_v19  ;;  %v443_v29 = vsub.f32 %v411_v55, %v379_v22  ;;  %v348_v30 = vadd.f32 %v226_v25, %v90_v8  ;;  %v349_v31 = vadd.f32 %v166_v26, %v91_v9  ;;  %v93_v32 = vadd.f32 %v61_v23, %v31_v28  ;;  %v36_v23 = vld [vmem:[%s927_s0 + $0xe0] sm:$0xff] }
  0x34   :  { %543 = vst [vmem:[%s928_s1 + $0x180] sm:$0xff] %v442_v19  ;;  %v167_v33 = vrot.slane %v92_v24, 7  ;;  %v264_v34 = vrot.slane %v92_v24, 1  ;;  %v414_v35 = vmul.f32 9.0, %v28_v61  ;;  %v415_v36 = vmul.f32 9.0, %v29_v5 }
  0x35   :  { %475 = vst [vmem:[%s928_s1 + $0x88] sm:$0xff] %v443_v29  ;;  %v380_v21 = vadd.f32 %v348_v30, %v263_v20  ;;  %v381_v37 = vadd.f32 %v349_v31, %v323_v27  ;;  %v265_v38 = vrot.slane %v93_v32, 1  ;;  %v168_v39 = vrot.slane %v93_v32, 7  ;;  %v37_v30 = vld [vmem:[%s927_s0 + $0xe8] sm:$0xff] }
  0x36   :  { %544 = vst [vmem:[%s928_s1 + $0x188] sm:$0xff] %v443_v29  ;;  %v227_v40 = vsel %vm136_vm0, %v92_v24, %v167_v33  ;;  %v62_v42 = vadd.f32 %v30_v18, %v28_v61  ;;  %v63_v43 = vadd.f32 %v31_v28, %v29_v5  ;;  %v416_v44 = vmul.f32 9.0, %v30_v18 }
  0x37   :  { %v444_v45 = vsub.f32 %v412_v0, %v380_v21  ;;  %v445_v46 = vsub.f32 %v413_v12, %v381_v37  ;;  %v266_v47 = vsel %vm233_vm1, %v264_v34, %v265_v38  ;;  %v350_v48 = vadd.f32 %v227_v40, %v92_v24 }
  0x38   :  { %v169_v50 = vsel %vm136_vm0, %v167_v33, %v168_v39  ;;  %v324_v51 = vsel %vm233_vm1, %v265_v38, %v93_v32  ;;  %v94_v52 = vadd.f32 %v62_v42, %v32_v41  ;;  %v95_v53 = vadd.f32 %v63_v43, %v33_v49  ;;  %v38_v42 = vld [vmem:[%s927_s0 + $0xf0] sm:$0xff] }
  0x39   :  { %476 = vst [vmem:[%s928_s1 + $0x90] sm:$0xff] %v444_v45  ;;  %v382_v54 = vadd.f32 %v350_v48, %v266_v47  ;;  %v351_v55 = vadd.f32 %v169_v50, %v93_v32  ;;  %v417_v56 = vmul.f32 9.0, %v31_v28  ;;  %v64_v57 = vadd.f32 %v32_v41, %v30_v18 }
  0x3a   :  { %545 = vst [vmem:[%s928_s1 + $0x190] sm:$0xff] %v444_v45  ;;  %v170_v58 = vrot.slane %v94_v52, 7  ;;  %v267_v59 = vrot.slane %v94_v52, 1  ;;  %v268_v60 = vrot.slane %v95_v53, 1  ;;  %v171_v61 = vrot.slane %v95_v53, 7 }
  0x3b   :  { %477 = vst [vmem:[%s928_s1 + $0x98] sm:$0xff] %v445_v46  ;;  %v446_v63 = vsub.f32 %v414_v35, %v382_v54  ;;  %v383_v0 = vadd.f32 %v351_v55, %v324_v51  ;;  %v65_v1 = vadd.f32 %v33_v49, %v31_v28  ;;  %v96_v2 = vadd.f32 %v64_v57, %v34_v62  ;;  %v39_v51 = vld [vmem:[%s927_s0 + $0xf8] sm:$0xff] }
  0x3c   :  { %546 = vst [vmem:[%s928_s1 + $0x198] sm:$0xff] %v445_v46  ;;  %v228_v3 = vsel %vm136_vm0, %v94_v52, %v170_v58  ;;  %v269_v4 = vsel %vm233_vm1, %v267_v59, %v268_v60  ;;  %v172_v5 = vsel %vm136_vm0, %v170_v58, %v171_v61  ;;  %v325_v6 = vsel %vm233_vm1, %v268_v60, %v95_v53 }
  0x3d   :  { %478 = vst [vmem:[%s928_s1 + $0xa0] sm:$0xff] %v446_v63  ;;  %v447_v8 = vsub.f32 %v415_v36, %v383_v0  ;;  %v352_v9 = vadd.f32 %v228_v3, %v94_v52  ;;  %v353_v10 = vadd.f32 %v172_v5, %v95_v53  ;;  %v97_v11 = vadd.f32 %v65_v1, %v35_v7 }
  0x3e   :  { %547 = vst [vmem:[%s928_s1 + $0x1a0] sm:$0xff] %v446_v63  ;;  %v173_v12 = vrot.slane %v96_v2, 7  ;;  %v270_v13 = vrot.slane %v96_v2, 1  ;;  %v418_v14 = vmul.f32 9.0, %v32_v41  ;;  %v419_v15 = vmul.f32 9.0, %v33_v49 }
  0x3f   :  { %479 = vst [vmem:[%s928_s1 + $0xa8] sm:$0xff] %v447_v8  ;;  %v384_v16 = vadd.f32 %v352_v9, %v269_v4  ;;  %v385_v17 = vadd.f32 %v353_v10, %v325_v6  ;;  %v271_v18 = vrot.slane %v97_v11, 1  ;;  %v174_v19 = vrot.slane %v97_v11, 7 }
  0x40   :  { %548 = vst [vmem:[%s928_s1 + $0x1a8] sm:$0xff] %v447_v8  ;;  %v229_v22 = vsel %vm136_vm0, %v96_v2, %v173_v12  ;;  %v66_v24 = vadd.f32 %v34_v62, %v32_v41  ;;  %v67_v25 = vadd.f32 %v35_v7, %v33_v49  ;;  %v420_v20 = vmul.f32 9.0, %v34_v62 }
  0x41   :  { %v448_v26 = vsub.f32 %v416_v44, %v384_v16  ;;  %v449_v27 = vsub.f32 %v417_v56, %v385_v17  ;;  %v272_v28 = vsel %vm233_vm1, %v270_v13, %v271_v18  ;;  %v354_v29 = vadd.f32 %v229_v22, %v96_v2 }
  0x42   :  { %v175_v31 = vsel %vm136_vm0, %v173_v12, %v174_v19  ;;  %v326_v32 = vsel %vm233_vm1, %v271_v18, %v97_v11  ;;  %v98_v33 = vadd.f32 %v66_v24, %v36_v23  ;;  %v99_v34 = vadd.f32 %v67_v25, %v37_v30 }
  0x43   :  { %480 = vst [vmem:[%s928_s1 + $0xb0] sm:$0xff] %v448_v26  ;;  %v386_v35 = vadd.f32 %v354_v29, %v272_v28  ;;  %v355_v36 = vadd.f32 %v175_v31, %v97_v11  ;;  %v421_v21 = vmul.f32 9.0, %v35_v7  ;;  %v68_v37 = vadd.f32 %v36_v23, %v34_v62 }
  0x44   :  { %549 = vst [vmem:[%s928_s1 + $0x1b0] sm:$0xff] %v448_v26  ;;  %v176_v38 = vrot.slane %v98_v33, 7  ;;  %v273_v39 = vrot.slane %v98_v33, 1  ;;  %v274_v40 = vrot.slane %v99_v34, 1  ;;  %v177_v41 = vrot.slane %v99_v34, 7 }
  0x45   :  { %481 = vst [vmem:[%s928_s1 + $0xb8] sm:$0xff] %v449_v27  ;;  %v450_v43 = vsub.f32 %v418_v14, %v386_v35  ;;  %v387_v44 = vadd.f32 %v355_v36, %v326_v32  ;;  %v69_v45 = vadd.f32 %v37_v30, %v35_v7  ;;  %v100_v46 = vadd.f32 %v68_v37, %v38_v42 }
  0x46   :  { %550 = vst [vmem:[%s928_s1 + $0x1b8] sm:$0xff] %v449_v27  ;;  %v230_v47 = vsel %vm136_vm0, %v98_v33, %v176_v38  ;;  %v275_v48 = vsel %vm233_vm1, %v273_v39, %v274_v40  ;;  %v178_v49 = vsel %vm136_vm0, %v176_v38, %v177_v41  ;;  %v327_v50 = vsel %vm233_vm1, %v274_v40, %v99_v34 }
  0x47   :  { %482 = vst [vmem:[%s928_s1 + $0xc0] sm:$0xff] %v450_v43  ;;  %v451_v52 = vsub.f32 %v419_v15, %v387_v44  ;;  %v356_v53 = vadd.f32 %v230_v47, %v98_v33  ;;  %v357_v54 = vadd.f32 %v178_v49, %v99_v34  ;;  %v101_v55 = vadd.f32 %v69_v45, %v39_v51 }
  0x48   :  { %551 = vst [vmem:[%s928_s1 + $0x1c0] sm:$0xff] %v450_v43  ;;  %v179_v56 = vrot.slane %v100_v46, 7  ;;  %v276_v57 = vrot.slane %v100_v46, 1  ;;  %v422_v63 = vmul.f32 9.0, %v36_v23  ;;  %v70_v0 = vadd.f32 %v38_v42, %v36_v23 }
  0x49   :  { %483 = vst [vmem:[%s928_s1 + $0xc8] sm:$0xff] %v451_v52  ;;  %v388_v58 = vadd.f32 %v356_v53, %v275_v48  ;;  %v389_v59 = vadd.f32 %v357_v54, %v327_v50  ;;  %v277_v60 = vrot.slane %v101_v55, 1  ;;  %v180_v61 = vrot.slane %v101_v55, 7 }
  0x4a   :  { %552 = vst [vmem:[%s928_s1 + $0x1c8] sm:$0xff] %v451_v52  ;;  %v231_v62 = vsel %vm136_vm0, %v100_v46, %v179_v56  ;;  %v71_v1 = vadd.f32 %v39_v51, %v37_v30  ;;  %v102_v8 = vadd.f32 %v70_v0, %v38_v42  ;;  %v423_v12 = vmul.f32 9.0, %v37_v30 }
  0x4b   :  { %v452_v2 = vsub.f32 %v420_v20, %v388_v58  ;;  %v453_v3 = vsub.f32 %v421_v21, %v389_v59  ;;  %v278_v4 = vsel %vm233_vm1, %v276_v57, %v277_v60  ;;  %v358_v5 = vadd.f32 %v231_v62, %v100_v46 }
  0x4c   :  { %v181_v6 = vsel %vm136_vm0, %v179_v56, %v180_v61  ;;  %v328_v7 = vsel %vm233_vm1, %v277_v60, %v101_v55  ;;  %v103_v9 = vadd.f32 %v71_v1, %v39_v51  ;;  %v182_v13 = vrot.slane %v102_v8, 7 }
  0x4d   :  { %484 = vst [vmem:[%s928_s1 + $0xd0] sm:$0xff] %v452_v2  ;;  %v390_v10 = vadd.f32 %v358_v5, %v278_v4  ;;  %v359_v11 = vadd.f32 %v181_v6, %v101_v55  ;;  %v279_v14 = vrot.slane %v102_v8, 1  ;;  %v424_v19 = vmul.f32 9.0, %v38_v42 }
  0x4e   :  { %553 = vst [vmem:[%s928_s1 + $0x1d0] sm:$0xff] %v452_v2  ;;  %v280_v15 = vrot.slane %v103_v9, 1  ;;  %v183_v16 = vrot.slane %v103_v9, 7  ;;  %v232_v22 = vsel %vm136_vm0, %v102_v8, %v182_v13  ;;  %v425_v28 = vmul.f32 9.0, %v39_v51 }
  0x4f   :  { %485 = vst [vmem:[%s928_s1 + $0xd8] sm:$0xff] %v453_v3  ;;  %v454_v17 = vsub.f32 %v422_v63, %v390_v10  ;;  %v391_v18 = vadd.f32 %v359_v11, %v328_v7  ;;  %v360_v26 = vadd.f32 %v232_v22, %v102_v8 }
  0x50   :  { %554 = vst [vmem:[%s928_s1 + $0x1d8] sm:$0xff] %v453_v3  ;;  %v281_v23 = vsel %vm233_vm1, %v279_v14, %v280_v15  ;;  %v184_v24 = vsel %vm136_vm0, %v182_v13, %v183_v16  ;;  %v329_v25 = vsel %vm233_vm1, %v280_v15, %v103_v9 }
  0x51   :  { %486 = vst [vmem:[%s928_s1 + $0xe0] sm:$0xff] %v454_v17  ;;  %v455_v20 = vsub.f32 %v423_v12, %v391_v18  ;;  %v361_v27 = vadd.f32 %v184_v24, %v103_v9  ;;  %v392_v29 = vadd.f32 %v360_v26, %v281_v23 }
  0x52   :  { %555 = vst [vmem:[%s928_s1 + $0x1e0] sm:$0xff] %v454_v17 }
  0x53   :  { %487 = vst [vmem:[%s928_s1 + $0xe8] sm:$0xff] %v455_v20  ;;  %v393_v30 = vadd.f32 %v361_v27, %v329_v25  ;;  %v456_v31 = vsub.f32 %v424_v19, %v392_v29 }
  0x54   :  { %556 = vst [vmem:[%s928_s1 + $0x1e8] sm:$0xff] %v455_v20 }
  0x55   :  { %v457_v32 = vsub.f32 %v425_v28, %v393_v30  ;;  %488 = vst [vmem:[%s928_s1 + $0xf0] sm:$0xff] %v456_v31 }
  0x56   :  { %557 = vst [vmem:[%s928_s1 + $0x1f0] sm:$0xff] %v456_v31 }
  0x57   :  { %489 = vst [vmem:[%s928_s1 + $0xf8] sm:$0xff] %v457_v32 }
  0x58   :  { %558 = vst [vmem:[%s928_s1 + $0x1f8] sm:$0xff] %v457_v32 }

</bundles_post_ra>
